<compile_context>
chip_gen: v7x
topology: tpu7x:2x2x1
jax: 0.10.0
libtpu: 0.0.40
codegen_flags: <defaults>
</compile_context>

<pallas_src>
import jax
import jax.numpy as jnp
from jax.experimental import pallas as pl
from jax.experimental.pallas import tpu as pltpu


def emos_kernel(x_ref, w_mu_ref, scal_ref, out_ref):
    # x_ref:    (E, TR)  input tile in its source dtype, ensemble-major,
    #                    rows on the lane (fast) axis
    # w_mu_ref: (E, 1)   f32 mu-linear weights (column vector)
    # scal_ref: (3,)     f32 SMEM scalars: [b_mu, w_sigma, b_sigma]
    # out_ref:  (2, TR)  f32 output tile, lane-dense
    x = x_ref[...].astype(jnp.float32)            # cast in-kernel, DMA was narrow dtype
    w = w_mu_ref[...].astype(jnp.float32)         # (E, 1), broadcasts along lanes
    b_mu = scal_ref[0]
    w_sig = scal_ref[1]
    b_sig = scal_ref[2]

    inv_e = 1.0 / x_ref.shape[0]                  # static 1/E

    # mu linear: per-row dot product over the ensemble (sublane) axis + bias
    x1 = jnp.sum(x * w, axis=0, keepdims=True) + b_mu          # (1, TR)

    # biased std via single-pass variance E[x^2] - E[x]^2, clamped at 0
    s1 = jnp.sum(x, axis=0, keepdims=True) * inv_e               # mean, (1, TR)
    s2 = jnp.sum(x * x, axis=0, keepdims=True) * inv_e           # E[x^2], (1, TR)
    var = jnp.maximum(s2 - s1 * s1, 0.0)
    std = jnp.sqrt(var)                                          # (1, TR)
    x2 = std * w_sig + b_sig                                     # (1, TR)

    out_ref[0:1, :] = x1
    out_ref[1:2, :] = x2


def _round_up(a, b):
    return ((a + b - 1) // b) * b


def _pick_tile_rows(n_rows, ens, in_itemsize, requested=4096):
    """Choose a lane-dense row tile: multiple of 128, VMEM-capped, grid >= 2 when possible."""
    r128 = _round_up(max(n_rows, 1), 128)
    # Stay well under the smallest scoped-VMEM default (v5e 16 MiB / v7x 32 MiB).
    budget = 8 * 1024 * 1024
    bytes_per_row = 2 * (ens * in_itemsize) + 2 * (2 * 4)   # dbl-buffered in + out
    cap = max(128, (budget // max(bytes_per_row, 1)) // 128 * 128)
    tile = min(_round_up(requested, 128), cap, r128)
    # Keep at least 2 grid steps when there are enough rows so both v7x
    # TensorCores get work on the "parallel" axis.
    if tile >= r128 and r128 >= 256:
        tile = _round_up((r128 + 1) // 2, 128)
    return max(min(tile, cap), 128)


def emos_forward(inp, w_mu, b_mu, w_sigma, b_sigma, *, tile_rows=4096):
    """inp: (..., ens_num). Returns (..., 2)."""
    orig_shape = inp.shape
    E = orig_shape[-1]
    lead = orig_shape[:-1]
    R = 1
    for d in lead:
        R *= d

    # Keep the source dtype (no wrapper upcast); cast to f32 inside the kernel.
    x2d = inp.reshape(R, E)
    # Ensemble-major layout: rows land on the 128-lane axis inside the kernel.
    # TODO(synk): if the caller can provide (E, rows)-major data directly, this
    # transpose (one extra HBM pass) disappears.
    xt = jnp.transpose(x2d, (1, 0))                               # (E, R)

    tr = _pick_tile_rows(R, E, jnp.dtype(inp.dtype).itemsize, tile_rows)
    R_pad = _round_up(R, tr)
    if R_pad > R:
        xt = jnp.pad(xt, ((0, 0), (0, R_pad - R)))                # zero rows -> std 0, no NaN

    w_mu_col = w_mu.reshape(E, 1).astype(jnp.float32)
    scalars = jnp.array([b_mu, w_sigma, b_sigma], dtype=jnp.float32)

    out = pl.pallas_call(
        emos_kernel,
        out_shape=jax.ShapeDtypeStruct((2, R_pad), jnp.float32),
        grid_spec=pltpu.PrefetchScalarGridSpec(
            num_scalar_prefetch=0,
            grid=(R_pad // tr,),
            in_specs=[
                pl.BlockSpec((E, tr), lambda i: (0, i)),
                pl.BlockSpec((E, 1), lambda i: (0, 0)),
                pl.BlockSpec(memory_space=pltpu.MemorySpace.SMEM),
            ],
            out_specs=pl.BlockSpec((2, tr), lambda i: (0, i)),
        ),
        compiler_params=pltpu.CompilerParams(
            dimension_semantics=("parallel",)),
    )(xt, w_mu_col, scalars)

    out = out[:, :R]                    # drop padded rows
    out = jnp.transpose(out, (1, 0))    # (R, 2) — cheap layout plumbing
    return out.reshape(lead + (2,))


def emos_reference(inp, w_mu, b_mu, w_sigma, b_sigma):
    x = inp.astype(jnp.float32)
    w = w_mu.reshape((1,) * (x.ndim - 1) + (-1,)).astype(jnp.float32)
    x1 = jnp.sum(x * w, axis=-1, keepdims=True) + b_mu
    std = jnp.std(x, axis=-1, keepdims=True)   # biased (ddof=0) == unbiased=False
    x2 = std * w_sigma + b_sigma
    return jnp.concatenate([x1, x2], axis=-1)


if __name__ == "__main__":
    key = jax.random.PRNGKey(0)
    k_x, k_wm, k_bm, k_ws, k_bs = jax.random.split(key, 5)

    B, N, E = 2, 16, 8  # ens_num = 8; rows = B*N = 32
    inp = jax.random.normal(k_x, (B, N, E), dtype=jnp.float32)

    # Deterministic parameter init (mimics nn.Linear weight/bias shapes).
    w_mu = jax.random.normal(k_wm, (1, E), dtype=jnp.float32) * 0.1   # Linear(E, 1).weight
    b_mu = jax.random.normal(k_bm, (), dtype=jnp.float32) * 0.1       # Linear(E, 1).bias
    w_sigma = jax.random.normal(k_ws, (), dtype=jnp.float32) * 0.1    # Linear(1, 1).weight
    b_sigma = jax.random.normal(k_bs, (), dtype=jnp.float32) * 0.1    # Linear(1, 1).bias

    out = emos_forward(inp, w_mu, b_mu, w_sigma, b_sigma)
    out = jax.block_until_ready(out)

    ref = emos_reference(inp, w_mu, b_mu, w_sigma, b_sigma)
    assert out.shape == (B, N, 2), out.shape
    assert jnp.allclose(out, ref, atol=1e-5, rtol=1e-5), (
        f"max abs err {jnp.max(jnp.abs(out - ref))}")

    print("KERNEL_OK")
</pallas_src>

<mosaic_0001>
module attributes {stable_mosaic.version = 11 : i64} {
  func.func @emos_kernel(%arg0: i32, %arg1: memref<8x128xf32, #tpu.memory_space<vmem>>, %arg2: memref<8x1xf32, #tpu.memory_space<vmem>>, %arg3: memref<3xf32, #tpu.memory_space<smem>>, %arg4: memref<2x128xf32, #tpu.memory_space<vmem>>) attributes {dimension_semantics = [#tpu.dimension_semantics<parallel>], iteration_bounds = array<i64: 1>, scalar_prefetch = 0 : i64, scratch_operands = 0 : i64, tpu.core_type = #tpu.core_type<tc>, window_params = [{transform_indices = @transform_0, window_bounds = array<i64: 8, 128>}, {pipeline_mode = #tpu.pipeline_mode<synchronous>, transform_indices = @transform_1, window_bounds = array<i64: 8, 1>}, {transform_indices = @transform_2, window_bounds = array<i64: 3>}, {transform_indices = @transform_3, window_bounds = array<i64: 2, 128>}]} {
    %c0 = arith.constant 0 : index
    %c0_0 = arith.constant 0 : index
    %0 = vector.load %arg1[%c0, %c0_0] : memref<8x128xf32, #tpu.memory_space<vmem>>, vector<8x128xf32>
    %c0_1 = arith.constant 0 : index
    %c0_2 = arith.constant 0 : index
    %1 = vector.load %arg2[%c0_1, %c0_2] : memref<8x1xf32, #tpu.memory_space<vmem>>, vector<8x1xf32>
    %c0_3 = arith.constant 0 : index
    %2 = memref.load %arg3[%c0_3] : memref<3xf32, #tpu.memory_space<smem>>
    %c1 = arith.constant 1 : index
    %3 = memref.load %arg3[%c1] : memref<3xf32, #tpu.memory_space<smem>>
    %c2 = arith.constant 2 : index
    %4 = memref.load %arg3[%c2] : memref<3xf32, #tpu.memory_space<smem>>
    %5 = vector.broadcast %1 : vector<8x1xf32> to vector<8x128xf32>
    %6 = arith.mulf %0, %5 : vector<8x128xf32>
    %cst = arith.constant dense<0.000000e+00> : vector<128xf32>
    %7 = vector.multi_reduction <add>, %6, %cst [0] : vector<8x128xf32> to vector<128xf32>
    %8 = vector.shape_cast %7 : vector<128xf32> to vector<1x128xf32>
    %9 = vector.broadcast %2 : f32 to vector<1x128xf32>
    %10 = arith.addf %8, %9 : vector<1x128xf32>
    %cst_4 = arith.constant dense<0.000000e+00> : vector<128xf32>
    %11 = vector.multi_reduction <add>, %0, %cst_4 [0] : vector<8x128xf32> to vector<128xf32>
    %12 = vector.shape_cast %11 : vector<128xf32> to vector<1x128xf32>
    %cst_5 = arith.constant 1.250000e-01 : f32
    %13 = vector.broadcast %cst_5 : f32 to vector<1x128xf32>
    %14 = arith.mulf %12, %13 : vector<1x128xf32>
    %15 = arith.mulf %0, %0 : vector<8x128xf32>
    %cst_6 = arith.constant dense<0.000000e+00> : vector<128xf32>
    %16 = vector.multi_reduction <add>, %15, %cst_6 [0] : vector<8x128xf32> to vector<128xf32>
    %17 = vector.shape_cast %16 : vector<128xf32> to vector<1x128xf32>
    %cst_7 = arith.constant 1.250000e-01 : f32
    %18 = vector.broadcast %cst_7 : f32 to vector<1x128xf32>
    %19 = arith.mulf %17, %18 : vector<1x128xf32>
    %20 = arith.mulf %14, %14 : vector<1x128xf32>
    %21 = arith.subf %19, %20 : vector<1x128xf32>
    %cst_8 = arith.constant 0.000000e+00 : f32
    %22 = vector.broadcast %cst_8 : f32 to vector<1x128xf32>
    %23 = arith.maximumf %21, %22 : vector<1x128xf32>
    %24 = math.sqrt %23 : vector<1x128xf32>
    %25 = vector.broadcast %3 : f32 to vector<1x128xf32>
    %26 = arith.mulf %24, %25 : vector<1x128xf32>
    %27 = vector.broadcast %4 : f32 to vector<1x128xf32>
    %28 = arith.addf %26, %27 : vector<1x128xf32>
    %c0_9 = arith.constant 0 : index
    %c0_10 = arith.constant 0 : index
    %29 = vector.load %arg4[%c0_9, %c0_10] : memref<2x128xf32, #tpu.memory_space<vmem>>, vector<1x128xf32>
    tpu.vector_store %arg4[%c0_9, %c0_10], %10 {strides = array<i32>} : memref<2x128xf32, #tpu.memory_space<vmem>>, vector<1x128xf32>,
    %c1_11 = arith.constant 1 : index
    %c0_12 = arith.constant 0 : index
    %30 = vector.load %arg4[%c1_11, %c0_12] : memref<2x128xf32, #tpu.memory_space<vmem>>, vector<1x128xf32>
    tpu.vector_store %arg4[%c1_11, %c0_12], %28 {strides = array<i32>} : memref<2x128xf32, #tpu.memory_space<vmem>>, vector<1x128xf32>,
    return
  }
  func.func @transform_0(%arg0: i32) -> (i32, i32) {
    %c0_i32 = arith.constant 0 : i32
    %c0_i32_0 = arith.constant 0 : i32
    return %c0_i32, %arg0 : i32, i32
  }
  func.func @transform_1(%arg0: i32) -> (i32, i32) {
    %c0_i32 = arith.constant 0 : i32
    %c0_i32_0 = arith.constant 0 : i32
    %c0_i32_1 = arith.constant 0 : i32
    return %c0_i32, %c0_i32_0 : i32, i32
  }
  func.func @transform_2(%arg0: i32) -> i32 {
    %c0_i32 = arith.constant 0 : i32
    %c0_i32_0 = arith.constant 0 : i32
    return %c0_i32 : i32
  }
  func.func @transform_3(%arg0: i32) -> (i32, i32) {
    %c0_i32 = arith.constant 0 : i32
    %c0_i32_0 = arith.constant 0 : i32
    return %c0_i32, %arg0 : i32, i32
  }
}

</mosaic_0001>

<bundles_post_ra>
// kernel: tpu_custom_call.1
= control target key start
LH: loop header
LB: loop body
LE: loop exit
PB: predicated region body
PF: predicated region fallthrough
CT: control target
= control target key end

     0   :  { %8 = vsyncpa [#allocation4], 0  ;;  %s183_s0 = inlined_call_operand.vmem [shape: f32[8,128], index: 0, kind: input, shape index: {}]   ;;  %s184_s1 = inlined_call_operand.vmem [shape: f32[8,1], index: 1, kind: input, shape index: {}]   ;;  %s185_s2 = inlined_call_operand.vmem [shape: f32[3], index: 2, kind: input, shape index: {}]   ;;  %s186_s3 = inlined_call_operand.hbm [shape: f32[2,128], index: 3, kind: output, shape index: {}]  }
   0x1   :  { %9 = vsyncpa [#allocation3], 0  ;;  %s20_s14 = sshll.u32 %s185_s2, 4  ;;  %s21_s14 = int_to_ptr.vmem [resolvable:$true] %s20_s14 }
   0x2   :  { %s101_s15 = scalar_lea.vmem %s21_s14, 16  ;;  %p106_p1 = scmp.lt.s32.totalorder %s21_s14, %s21_s14 }
   0x3   :  { %p102_p0 = scmp.ne.s32.totalorder %s21_s14, %s101_s15  ;;  %p107_p2 = scmp.lt.s32.totalorder %s101_s15, %s101_s15 }
   0x5   :  { %p108_p3 = por %p107_p2, %p106_p1 }
   0x7   :  { %p109_p4 = pnand %p108_p3, %p102_p0 }
   0x9   :  { %112 = shalt.err (!%p109_p4)
}
   0xa   :  { %s139_s16 = smov [#allocation2]  }
   0xb   :  { %23 = dma.vmem_to_smem %s21_s14, 16, %s139_s16, [#allocation4]  }
   0xc   :  { %135 = dma.done.wait [#allocation4], 16  }
   0xd   :  { %136 = vsyncadd [#allocation4], 4294967280 }
   0xe   :  { %27 = sfence }
   0xf   :  { %v29_v0 = vld [vmem:[%s184_s1] sm:$0xff]  ;;  %v140_v2 = vmov 0   ;;  %s94_s1 = sld [smem:[#allocation2 + $0x2]]  ;;  %s30_s2 = sld [smem:[#allocation2]] }
  0x10   :  { %v28_v1 = vld [vmem:[%s183_s0] sm:$0xff]  ;;  %98 = vset.pattern.permute.xlu0 %v140_v2  ;;  %s93_s0 = sld [smem:[#allocation2 + $0x1]]  ;;  %s141_s21 = smov [#allocation5]  }
  0x11   :  { %v47_v3 = vrot.slane %v28_v1, 4  ;;  %v54_v4 = vmul.f32 %v28_v1, %v28_v1  ;;  %35 = vperm.xlu0 %98, %v29_v0   ;;  %s84_s22 = sshll.u32 %s141_s21, 4  ;;  %s85_s22 = int_to_ptr.vmem [resolvable:$true] %s84_s22 }
  0x12   :  { %s113_s23 = scalar_lea.vmem %s85_s22, 32  ;;  %p118_p6 = scmp.lt.s32.totalorder %s85_s22, %s85_s22 }
  0x13   :  { %v48_v5 = vadd.f32 %v47_v3, %v28_v1  ;;  %v55_v6 = vrot.slane %v54_v4, 4  ;;  %p114_p5 = scmp.ne.s32.totalorder %s85_s22, %s113_s23  ;;  %p119_p7 = scmp.lt.s32.totalorder %s113_s23, %s113_s23 }
  0x15   :  { %v49_v7 = vrot.slane %v48_v5, 2  ;;  %v56_v8 = vadd.f32 %v55_v6, %v54_v4  ;;  %v74_v27 = vstv %s94_s1  ;;  %v45_v37 = vstv %s30_s2  ;;  %p120_p8 = por %p119_p7, %p118_p6 }
  0x16   :  { %v72_v24 = vstv %s93_s0 }
  0x17   :  { %v50_v9 = vadd.f32 %v49_v7, %v48_v5  ;;  %v57_v10 = vrot.slane %v56_v8, 2  ;;  %p121_p9 = pnand %p120_p8, %p114_p5 }
  0x19   :  { %v51_v11 = vrot.slane %v50_v9, 1  ;;  %v58_v12 = vadd.f32 %v57_v10, %v56_v8 }
  0x1b   :  { %v52_v13 = vadd.f32 %v51_v11, %v50_v9  ;;  %v59_v14 = vrot.slane %v58_v12, 1 }
  0x1d   :  { %v53_v15 = vmul.f32 0.125, %v52_v13  ;;  %v60_v16 = vadd.f32 %v59_v14, %v58_v12 }
  0x1f   :  { %v61_v17 = vmul.f32 0.125, %v60_v16  ;;  %v62_v18 = vmul.f32 %v53_v15, %v53_v15 }
  0x21   :  { %v63_v19 = vsub.f32 %v61_v17, %v62_v18 }
  0x23   :  { %v64_v20 = vmax.f32 %v63_v19, 0.0 }
  0x25   :  { %99 = vrsqrt.f32 %v64_v20  ;;  %vm67_vm0 = vcmp.eq.f32.partialorder %v64_v20, inf  ;;  %v70_v22 = vand.u32 2147483648, %v64_v20  ;;  %vm69_vm1 = vcmp.eq.f32.partialorder %v64_v20, 0.0 }
  0x2f   :  { %v100_v21 = vpop.eup %99 }
  0x30   :  { %v66_v23 = vmul.f32 %v100_v21, %v64_v20 }
  0x32   :  { %v68_v25 = vsel %vm67_vm0, %v64_v20, %v66_v23 }
  0x33   :  { %v71_v26 = vsel %vm69_vm1, %v70_v22, %v68_v25 }
  0x34   :  { %v73_v28 = vmul.f32 %v72_v24, %v71_v26 }
  0x36   :  { %v75_v29 = vadd.f32 %v74_v27, %v73_v28 }
  0x38   :  { %77 = vst [vmem:[#allocation5 + $0x1] sm:$0x1] %v75_v29 }
  0x90   :  { %v36_v30 = vpop.permute.xlu0 %35 }
  0x91   :  { %v38_v31 = vmul.f32 %v36_v30, %v28_v1 }
  0x93   :  { %v39_v32 = vrot.slane %v38_v31, 4 }
  0x95   :  { %v40_v33 = vadd.f32 %v39_v32, %v38_v31 }
  0x97   :  { %v41_v34 = vrot.slane %v40_v33, 2 }
  0x99   :  { %v42_v35 = vadd.f32 %v41_v34, %v40_v33 }
  0x9b   :  { %v43_v36 = vrot.slane %v42_v35, 1 }
  0x9d   :  { %v44_v38 = vadd.f32 %v43_v36, %v42_v35 }
  0x9f   :  { %v46_v39 = vadd.f32 %v45_v37, %v44_v38 }
  0xa1   :  { %76 = vst [vmem:[#allocation5] sm:$0x1] %v46_v39 }
  0xa2   :  { %124 = shalt.err (!%p121_p9)
}
  0xa3   :  { %s125_s26 = scalar_lea.hbm %s186_s3, 32 }
  0xa4   :  { %p126_p10 = scmp.ne.s32.totalorder %s186_s3, %s125_s26  ;;  %p129_p11 = scmp.lt.u32.totalorder %s125_s26, %s186_s3 }
  0xa6   :  { %p131_p12 = pnand %p129_p11, %p126_p10 }
  0xa8   :  { %134 = shalt.err (!%p131_p12)
}
  0xa9   :  { %87 = dma.vmem_to_hbm [thread:$0]  %s85_s22, 32, %s186_s3, [#allocation3]  }
  0xaa   :  { %137 = dma.done.wait [#allocation3], 32  }
  0xab   :  { %138 = vsyncadd [#allocation3], 4294967264 }
  0xac   :  { %91 = vsyncpa [#allocation3], 1 }
  0xad   :  { %92 = vsyncpa [#allocation4], 1 }

</bundles_post_ra>
